<compile_context>
chip_gen: v7x
topology: tpu7x:2x2x1
jax: 0.10.0
libtpu: 0.0.40
codegen_flags: <defaults>
</compile_context>

<pallas_src>
import jax
import jax.numpy as jnp
from jax.experimental import pallas as pl
from jax.experimental.pallas import tpu as pltpu


def _vmem():
    return pl.BlockSpec(memory_space=pltpu.MemorySpace.VMEM)


# --------------------------- Pallas kernels ---------------------------------

def _make_upconv2x2_kernel(N, H, W, Cout):
    def kernel(x_ref, w_ref, b_ref, o_ref):
        # x: (N*H*W, Cin) f32 ; w: (Cin, 4*Cout) bf16, columns ordered (dh, dw, co)
        # b: (1, 4*Cout) f32  ; o: (N, H, 2, W, 2*Cout) f32
        x = x_ref[...].astype(jnp.bfloat16)
        y = jnp.dot(x, w_ref[...], preferred_element_type=jnp.float32) + b_ref[...]
        c2 = 2 * Cout
        # Write the two dh output rows directly in their interleaved positions:
        # (N, H, dh, W, dw*Cout) flattens row-major to NHWC (N, 2H, 2W, Cout).
        o_ref[:, :, 0, :, :] = y[:, :c2].reshape(N, H, W, c2)
        o_ref[:, :, 1, :, :] = y[:, c2:].reshape(N, H, W, c2)
    return kernel


def _make_conv3x3_kernel(has_skip, fuse_head):
    def kernel(*refs):
        it = iter(refs)
        x_ref = next(it)                               # (N, H, W, C1) f32
        skip_ref = next(it) if has_skip else None      # (N, H, W, C2) f32
        w_ref = next(it)                               # (9*Ct, Cout) bf16
        g_ref = next(it)                               # (1, Cout) f32 (BN gamma)
        b_ref = next(it)                               # (1, Cout) f32 (BN beta)
        if fuse_head:
            hw_ref = next(it)                          # (Co, Cout) bf16 (1x1 weight)
            hb_ref = next(it)                          # (Co, 1) f32 (1x1 bias)
        o_ref = next(it)                               # (M, Cout) or (Co, M)
        xp_ref = next(it)                              # scratch (N, H+2, W+2, Ct) f32

        N, Hp, Wp, Ct = xp_ref.shape
        H, W = Hp - 2, Wp - 2
        M = N * H * W

        # Build the zero-padded (and channel-concatenated) input in VMEM scratch.
        xp_ref[...] = jnp.zeros_like(xp_ref)
        interior = x_ref[...]
        if has_skip:
            interior = jnp.concatenate([interior, skip_ref[...]], axis=-1)
        xp_ref[:, 1:H + 1, 1:W + 1, :] = interior

        # im2col: fold the 9 shifted windows into one wide-K operand -> single MXU matmul.
        cols = jnp.concatenate(
            [xp_ref[:, dy:dy + H, dx:dx + W, :].reshape(M, Ct)
             for dy in range(3) for dx in range(3)], axis=-1)        # (M, 9*Ct) f32
        acc = jnp.dot(cols.astype(jnp.bfloat16), w_ref[...],
                      preferred_element_type=jnp.float32)            # (M, Cout) f32

        # BatchNorm2d (training-mode batch stats, eps=1e-5) folded to scale/shift, then ReLU.
        mean = jnp.mean(acc, axis=0, keepdims=True)
        var = jnp.mean((acc - mean) * (acc - mean), axis=0, keepdims=True)
        scale = g_ref[...] * jax.lax.rsqrt(var + 1e-5)
        shift = b_ref[...] - mean * scale
        y = jnp.maximum(acc * scale + shift, 0.0)

        if fuse_head:
            # Fused Conv2d(1x1) + bias + Sigmoid, computed transposed so the
            # output (Co, M) is lane-dense along M instead of masked (M, 1) stores.
            z = jax.lax.dot_general(hw_ref[...], y.astype(jnp.bfloat16),
                                    dimension_numbers=(((1,), (1,)), ((), ())),
                                    preferred_element_type=jnp.float32)
            z = z + hb_ref[...]
            o_ref[...] = 1.0 / (1.0 + jnp.exp(-z))
        else:
            o_ref[...] = y
    return kernel


# --------------------------- Kernel wrappers ---------------------------------

def upconv2x2(x_nhwc, w, b):
    """ConvTranspose2d(kernel=2, stride=2) + bias.  w: torch layout (Cin, Cout, 2, 2)."""
    N, H, W, Cin = x_nhwc.shape
    Cout = w.shape[1]
    # Fold the 4 taps into one wide matmul; columns ordered (dh, dw, cout).
    w4 = jnp.transpose(w, (0, 2, 3, 1)).reshape(Cin, 4 * Cout).astype(jnp.bfloat16)
    b4 = jnp.tile(b.reshape(1, Cout), (1, 4))          # bias added once (tiled per tap)
    xf = x_nhwc.reshape(N * H * W, Cin)                 # free row-major reshape
    out = pl.pallas_call(
        _make_upconv2x2_kernel(N, H, W, Cout),
        out_shape=jax.ShapeDtypeStruct((N, H, 2, W, 2 * Cout), jnp.float32),
        in_specs=[_vmem() for _ in range(3)],
        out_specs=_vmem(),
    )(xf, w4, b4)
    # (N, H, dh, W, dw, Cout) is already interleaved -> free reshape to NHWC.
    return out.reshape(N, 2 * H, 2 * W, Cout)


def conv3x3_bn_relu(x_nhwc, w, gamma, beta, skip=None, head_w=None, head_b=None):
    """Conv2d(3x3, pad=1, no bias) [+ fused channel-concat of skip] + BatchNorm2d + ReLU.

    If head_w/head_b are given, also fuses Conv2d(1x1)+bias+Sigmoid and returns the
    head output in channel-first layout (Co, N, H, W).  w: torch (Cout, Cin_total, 3, 3).
    """
    N, H, W, C1 = x_nhwc.shape
    Cout, Cin_tot = w.shape[0], w.shape[1]
    has_skip = skip is not None
    fuse_head = head_w is not None
    assert Cin_tot == C1 + (skip.shape[-1] if has_skip else 0)

    wk = jnp.transpose(w, (2, 3, 1, 0)).reshape(9 * Cin_tot, Cout).astype(jnp.bfloat16)
    args = [x_nhwc] + ([skip] if has_skip else [])
    args += [wk, gamma.reshape(1, Cout), beta.reshape(1, Cout)]
    if fuse_head:
        Co = head_w.shape[0]
        args += [head_w.reshape(Co, Cout).astype(jnp.bfloat16), head_b.reshape(Co, 1)]
        out_shape = jax.ShapeDtypeStruct((Co, N * H * W), jnp.float32)
    else:
        out_shape = jax.ShapeDtypeStruct((N * H * W, Cout), jnp.float32)

    out = pl.pallas_call(
        _make_conv3x3_kernel(has_skip, fuse_head),
        out_shape=out_shape,
        in_specs=[_vmem() for _ in args],
        out_specs=_vmem(),
        scratch_shapes=[pltpu.VMEM((N, H + 2, W + 2, Cin_tot), jnp.float32)],
    )(*args)
    if fuse_head:
        return out.reshape(head_w.shape[0], N, H, W)    # channel-first; caller -> NCHW
    return out.reshape(N, H, W, Cout)                   # free row-major reshape


# --------------------------- Model (params + forward) ------------------------

def init_params(key, in_channels, skip_channels, out_channels):
    """Deterministic synthetic parameters matching the PyTorch module's shapes."""
    params = {"blocks": []}
    for i, (ic, sc) in enumerate(zip(in_channels, skip_channels)):
        last_ch = in_channels[0] * 2 if i == 0 else in_channels[i - 1]
        key, k1, k2, k3, k4 = jax.random.split(key, 5)
        params["blocks"].append({
            # nn.ConvTranspose2d(last_ch, ic, 2, 2): weight (Cin, Cout, 2, 2) + bias
            "up_w": 0.1 * jax.random.normal(k1, (last_ch, ic, 2, 2), jnp.float32),
            "up_b": 0.1 * jax.random.normal(k2, (ic,), jnp.float32),
            # Conv2dReLU #1: Conv2d(ic+sc -> ic, 3x3, no bias) + BN(ic)
            "conv1_w": 0.1 * jax.random.normal(k3, (ic, ic + sc, 3, 3), jnp.float32),
            "conv1_g": jnp.ones((ic,), jnp.float32),
            "conv1_b": jnp.zeros((ic,), jnp.float32),
            # Conv2dReLU #2: Conv2d(ic -> ic, 3x3, no bias) + BN(ic)
            "conv2_w": 0.1 * jax.random.normal(k4, (ic, ic, 3, 3), jnp.float32),
            "conv2_g": jnp.ones((ic,), jnp.float32),
            "conv2_b": jnp.zeros((ic,), jnp.float32),
        })
    key, k5, k6 = jax.random.split(key, 3)
    params["last_w"] = 0.1 * jax.random.normal(
        k5, (out_channels, in_channels[-1], 1, 1), jnp.float32)
    params["last_b"] = 0.1 * jax.random.normal(k6, (out_channels,), jnp.float32)
    return params


def decoder_cup_vit_forward(params, x_nchw, features_nchw=None,
                            skip_channels=(16, 8, 8)):
    """Matches DecoderCup_vit.forward (rqchannel=None, use_sig=True).  I/O are NCHW."""
    features = features_nchw[::-1] if features_nchw is not None else None
    x = jnp.transpose(x_nchw, (0, 2, 3, 1))              # NCHW -> NHWC
    n_blocks = len(params["blocks"])
    for i, blk in enumerate(params["blocks"]):
        x = upconv2x2(x, blk["up_w"], blk["up_b"])       # DecoderBlock.up
        skip = None
        if features is not None and skip_channels[i] != 0:
            skip = features[i] if i < len(features) else None
        if skip is not None:
            skip = jnp.transpose(skip, (0, 2, 3, 1))     # NCHW -> NHWC (concat fused in-kernel)
        x = conv3x3_bn_relu(x, blk["conv1_w"], blk["conv1_g"], blk["conv1_b"], skip=skip)
        last = (i == n_blocks - 1)
        x = conv3x3_bn_relu(x, blk["conv2_w"], blk["conv2_g"], blk["conv2_b"],
                            head_w=params["last_w"] if last else None,
                            head_b=params["last_b"] if last else None)
    # Fused head returned channel-first (Co, N, H, W) -> NCHW.
    return jnp.transpose(x, (1, 0, 2, 3))


# --------------------------- Demo -------------------------------------------

if __name__ == "__main__":
    # Small configuration consistent with the module's channel wiring:
    #   in_channels = skip_channels = [16, 8, 8]; input has in_channels[0]*2 = 32 ch.
    in_channels = [16, 8, 8]
    skip_channels = [16, 8, 8]
    N = 2

    key = jax.random.PRNGKey(0)
    kp, kx, kf0, kf1, kf2 = jax.random.split(key, 5)
    params = init_params(kp, in_channels, skip_channels, out_channels=1)

    x = jax.random.normal(kx, (N, in_channels[0] * 2, 2, 2), jnp.float32)
    # Features in the order the caller supplies them (forward reverses the list):
    # original[-1] is consumed by block 0 (smallest spatial), etc.
    features = [
        jax.random.normal(kf2, (N, skip_channels[2], 16, 16), jnp.float32),
        jax.random.normal(kf1, (N, skip_channels[1], 8, 8), jnp.float32),
        jax.random.normal(kf0, (N, skip_channels[0], 4, 4), jnp.float32),
    ]

    out = decoder_cup_vit_forward(params, x, features, skip_channels=skip_channels)
    out = jax.block_until_ready(out)

    assert out.shape == (N, 1, 16, 16), out.shape
    assert bool(jnp.all(jnp.isfinite(out)))
    assert bool(jnp.all((out >= 0.0) & (out <= 1.0)))   # sigmoid output range
    print("KERNEL_OK")
</pallas_src>

<mosaic_0001>
module attributes {stable_mosaic.version = 11 : i64} {
  func.func @kernel(%arg0: memref<8x32xf32, #tpu.memory_space<vmem>>, %arg1: memref<32x64xbf16, #tpu.memory_space<vmem>>, %arg2: memref<1x64xf32, #tpu.memory_space<vmem>>, %arg3: memref<2x2x2x2x32xf32, #tpu.memory_space<vmem>>) attributes {dimension_semantics = [], scalar_prefetch = 0 : i64, scratch_operands = 0 : i64, tpu.core_type = #tpu.core_type<tc>} {
    %c0 = arith.constant 0 : index
    %c0_0 = arith.constant 0 : index
    %0 = vector.load %arg0[%c0, %c0_0] : memref<8x32xf32, #tpu.memory_space<vmem>>, vector<8x32xf32>
    %1 = arith.truncf %0 : vector<8x32xf32> to vector<8x32xbf16>
    %c0_1 = arith.constant 0 : index
    %c0_2 = arith.constant 0 : index
    %2 = vector.load %arg1[%c0_1, %c0_2] : memref<32x64xbf16, #tpu.memory_space<vmem>>, vector<32x64xbf16>
    %cst = arith.constant dense<0.000000e+00> : vector<8x64xf32>
    %3 = tpu.matmul %1, %2, %cst {dimension_numbers = #tpu.dot_dimension_numbers<[1], [0], [0], [1], [0, 0, 1, 1], [], []>} : vector<8x32xbf16>, vector<32x64xbf16>, vector<8x64xf32> -> vector<8x64xf32>
    %c0_3 = arith.constant 0 : index
    %c0_4 = arith.constant 0 : index
    %4 = vector.load %arg2[%c0_3, %c0_4] : memref<1x64xf32, #tpu.memory_space<vmem>>, vector<1x64xf32>
    %5 = vector.broadcast %4 : vector<1x64xf32> to vector<8x64xf32>
    %6 = arith.addf %3, %5 : vector<8x64xf32>
    %7 = vector.extract_strided_slice %6 {offsets = [0, 0], sizes = [8, 32], strides = [1, 1]} : vector<8x64xf32> to vector<8x32xf32>
    %8 = vector.shape_cast %7 : vector<8x32xf32> to vector<2x2x2x32xf32>
    %c0_5 = arith.constant 0 : index
    %c0_6 = arith.constant 0 : index
    %c0_7 = arith.constant 0 : index
    %c0_8 = arith.constant 0 : index
    %c0_9 = arith.constant 0 : index
    %9 = vector.load %arg3[%c0_5, %c0_6, %c0_7, %c0_8, %c0_9] : memref<2x2x2x2x32xf32, #tpu.memory_space<vmem>>, vector<2x2x1x2x32xf32>
    %10 = vector.shape_cast %9 : vector<2x2x1x2x32xf32> to vector<2x2x2x32xf32>
    %11 = vector.shape_cast %8 : vector<2x2x2x32xf32> to vector<2x2x1x2x32xf32>
    tpu.vector_store %arg3[%c0_5, %c0_6, %c0_7, %c0_8, %c0_9], %11 {strides = array<i32>} : memref<2x2x2x2x32xf32, #tpu.memory_space<vmem>>, vector<2x2x1x2x32xf32>,
    %12 = vector.extract_strided_slice %6 {offsets = [0, 32], sizes = [8, 32], strides = [1, 1]} : vector<8x64xf32> to vector<8x32xf32>
    %13 = vector.shape_cast %12 : vector<8x32xf32> to vector<2x2x2x32xf32>
    %c0_10 = arith.constant 0 : index
    %c0_11 = arith.constant 0 : index
    %c1 = arith.constant 1 : index
    %c0_12 = arith.constant 0 : index
    %c0_13 = arith.constant 0 : index
    %14 = vector.load %arg3[%c0_10, %c0_11, %c1, %c0_12, %c0_13] : memref<2x2x2x2x32xf32, #tpu.memory_space<vmem>>, vector<2x2x1x2x32xf32>
    %15 = vector.shape_cast %14 : vector<2x2x1x2x32xf32> to vector<2x2x2x32xf32>
    %16 = vector.shape_cast %13 : vector<2x2x2x32xf32> to vector<2x2x1x2x32xf32>
    tpu.vector_store %arg3[%c0_10, %c0_11, %c1, %c0_12, %c0_13], %16 {strides = array<i32>} : memref<2x2x2x2x32xf32, #tpu.memory_space<vmem>>, vector<2x2x1x2x32xf32>,
    return
  }
}

</mosaic_0001>

<bundles_post_ra>
// kernel: tpu_custom_call.1
= control target key start
LH: loop header
LB: loop body
LE: loop exit
PB: predicated region body
PF: predicated region fallthrough
CT: control target
= control target key end

     0   :  { %8 = vsyncpa [#allocation3], 0  ;;  %s386_s0 = inlined_call_operand.hbm [shape: f32[8,32], index: 0, kind: input, shape index: {}]   ;;  %s387_s1 = inlined_call_operand.hbm [shape: bf16[32,64], index: 1, kind: input, shape index: {}]   ;;  %s388_s2 = inlined_call_operand.vmem [shape: f32[1,64], index: 2, kind: input, shape index: {}]   ;;  %s389_s3 = inlined_call_operand.hbm [shape: f32[2,2,2,2,32], index: 3, kind: output, shape index: {}]  }
   0x1   :  { %9 = vsyncpa [#allocation6], 0 }
   0x2   :  { %10 = vsyncpa [#allocation4], 0  ;;  %s301_s12 = smov [#allocation2]   ;;  %s302_s14 = smov [#allocation5]  }
   0x3   :  { %s17_s13 = sshll.u32 %s301_s12, 4  ;;  %s26_s15 = sshll.u32 %s302_s14, 4  ;;  %s18_s13 = int_to_ptr.vmem [resolvable:$true] %s17_s13  ;;  %s332_s15 = int_to_ptr.vmem [resolvable:$true] %s26_s15 }
   0x4   :  { %s229_s18 = scalar_lea.hbm %s386_s0, 128 }
   0x5   :  { %p230_p0 = scmp.ne.s32.totalorder %s386_s0, %s229_s18  ;;  %p233_p1 = scmp.lt.u32.totalorder %s229_s18, %s386_s0 }
   0x7   :  { %p235_p2 = pnand %p233_p1, %p230_p0 }
   0x9   :  { %238 = shalt.err (!%p235_p2)
}
   0xa   :  { %s239_s23 = scalar_lea.vmem %s18_s13, 128  ;;  %p244_p4 = scmp.lt.s32.totalorder %s18_s13, %s18_s13 }
   0xb   :  { %p240_p3 = scmp.ne.s32.totalorder %s18_s13, %s239_s23  ;;  %p245_p5 = scmp.lt.s32.totalorder %s239_s23, %s239_s23 }
   0xd   :  { %p246_p6 = por %p245_p5, %p244_p4 }
   0xf   :  { %p247_p7 = pnand %p246_p6, %p240_p3 }
  0x11   :  { %250 = shalt.err (!%p247_p7)
}
  0x12   :  { %20 = dma.hbm_to_vmem [thread:$0]  %s386_s0, 128, %s18_s13, [#allocation3]  }
  0x13   :  { %s251_s28 = scalar_lea.hbm %s387_s1, 256 }
  0x14   :  { %p252_p8 = scmp.ne.s32.totalorder %s387_s1, %s251_s28  ;;  %p255_p9 = scmp.lt.u32.totalorder %s251_s28, %s387_s1 }
  0x16   :  { %p257_p10 = pnand %p255_p9, %p252_p8 }
  0x18   :  { %260 = shalt.err (!%p257_p10)
}
  0x19   :  { %s261_s6 = scalar_lea.vmem %s332_s15, 256  ;;  %p266_p12 = scmp.lt.s32.totalorder %s332_s15, %s332_s15 }
  0x1a   :  { %p262_p11 = scmp.ne.s32.totalorder %s332_s15, %s261_s6  ;;  %p267_p13 = scmp.lt.s32.totalorder %s261_s6, %s261_s6 }
  0x1c   :  { %p268_p0 = por %p267_p13, %p266_p12 }
  0x1e   :  { %p269_p1 = pnand %p268_p0, %p262_p11 }
  0x20   :  { %272 = shalt.err (!%p269_p1)
}
  0x21   :  { %s303_s0 = smov 64   ;;  %s304_s7 = smov 4  }
  0x22   :  { %32 = dma.hbm_to_vmem [thread:$0]  %s387_s1, 256, %s332_s15, [#allocation6], %s303_s0, %s303_s0, %s304_s7  }
  0x23   :  { %295 = dma.done.wait [#allocation3], 128  }
  0x24   :  { %296 = vsyncadd [#allocation3], 4294967168 }
  0x25   :  { %297 = dma.done.wait [#allocation6], 256  }
  0x26   :  { %298 = vsyncadd [#allocation6], 4294967040  ;;  %v305_v0 = vmov 0.0   ;;  %vm306_vm0 = vmmov 0   ;;  %v227_v1 = vld [vmem:[#allocation5] sm:$0xff]   ;;  %v228_v2 = vld [vmem:[#allocation5 + $0x8] sm:$0xff]   ;;  %v116_v7 = vlaneseq }
  0x27   :  { %208 = vmatprep.subr.bf16.mxu0 %v305_v0  ;;  %212 = vmatprep.mubr.msk.bf16.mxu0 %vm306_vm0, %v305_v0  ;;  %v42_v3 = vld [vmem:[#allocation2] sm:$0xff]  ;;  %vm67_vm1 = vcmask 261120   ;;  %v307_v5 = vmov 1983009808   ;;  %vm133_vm2 = vcmask 254976   ;;  %s308_s11 = smov 96  }
  0x28   :  { %209 = vmatpush3.bf16.msra.mxu0 %v227_v1  ;;  %v43_v4 = vpack.c.bf16 %v42_v3, %v42_v3  ;;  %v114_v6 = vunpack.c.l.s4 %v307_v5  ;;  %v117_v9 = vshrl.u32 %v116_v7, 7  ;;  %v201_v10 = vld [vmem:[%s388_s2] ss:$0 sm:$0xff]  ;;  %s309_s2 = smov [#allocation7]  }
  0x29   :  { %210 = vmatprep.subr.bf16.mxu0 %v305_v0  ;;  %s188_s12 = sshll.u32 %s309_s2, 4  ;;  %s189_s12 = int_to_ptr.vmem [resolvable:$true] %s188_s12 }
  0x2a   :  { %v115_v8 = vunpack.c.0.s8 %v114_v6  ;;  %s273_s13 = scalar_lea.vmem %s189_s12, 256  ;;  %p278_p3 = scmp.lt.s32.totalorder %s189_s12, %s189_s12 }
  0x2b   :  { %p274_p2 = scmp.ne.s32.totalorder %s189_s12, %s273_s13  ;;  %p279_p4 = scmp.lt.s32.totalorder %s273_s13, %s273_s13 }
  0x2c   :  { %211 = vmatpush3.bf16.msra.mxu0 %v228_v2  ;;  %v118_v11 = vsub.s32 %v115_v8, %v117_v9 }
  0x2d   :  { %p280_p5 = por %p279_p4, %p278_p3 }
  0x2f   :  { %213 = vmatmul.mubr.msk.bf16.vlgmr.msra.gmra.mrb[0].mxu0 %vm67_vm1, %v43_v4  ;;  %p281_p6 = pnand %p280_p5, %p274_p2 }
 0x102   :  { %v105_v12 = vpop.f32.mrb[0].mxu0 }
 0x103   :  { %v106_v13 = vadd.f32 %v201_v10, %v105_v12  ;;  %v214_v14 = vpop.f32.mrb[1].mxu0 }
 0x104   :  { %v108_v15 = vpop.f32.mrb[2].mxu0 }
 0x105   :  { %v112_v16 = vcombine.high %v106_v13, %v106_v13  ;;  %v119_v17 = vrot.slane %v106_v13, %v118_v11  ;;  %v215_v18 = vpop.f32.mrb[3].mxu0 }
 0x107   :  { %v126_v19 = vrot.slane %v112_v16, %v118_v11  ;;  %134 = vst.msk [vmem:[#allocation7] sm:$0x3] %vm133_vm2, %v119_v17  ;;  %v144_v20 = vrot.slane %v119_v17, %v118_v11  ;;  %v127_v21 = vcombine.high %v119_v17, %v119_v17 }
 0x109   :  { %136 = vst.msk [vmem:[#allocation7 + $0x8] sm:$0x3] %vm133_vm2, %v126_v19  ;;  %166 = vrot.lane.b32.xlu0 %v144_v20, %s308_s11  ;;  %v158_v22 = vrot.slane %v126_v19, %v118_v11  ;;  %135 = vst.msk [vmem:[#allocation7 + $0x4] sm:$0x3] %vm133_vm2, %v127_v21  ;;  %v128_v23 = vcombine.high %v126_v19, %v126_v19  ;;  %v151_v24 = vrot.slane %v127_v21, %v118_v11 }
 0x10b   :  { %170 = vrot.lane.b32.xlu1 %v158_v22, %s308_s11  ;;  %137 = vst.msk [vmem:[#allocation7 + $0xc] sm:$0x3] %vm133_vm2, %v128_v23  ;;  %v165_v25 = vrot.slane %v128_v23, %v118_v11 }
 0x10d   :  { %168 = vrot.lane.b32.xlu0 %v151_v24, %s308_s11 }
 0x10f   :  { %172 = vrot.lane.b32.xlu1 %v165_v25, %s308_s11 }
 0x17b   :  { %v167_v26 = vpop.permute.xlu0 %166 }
 0x17c   :  { %179 = vst.msk [vmem:[#allocation7 + $0x2] sm:$0x3] %vm133_vm2, %v167_v26 }
 0x17d   :  { %v171_v27 = vpop.permute.xlu1 %170 }
 0x17e   :  { %181 = vst.msk [vmem:[#allocation7 + $0xa] sm:$0x3] %vm133_vm2, %v171_v27 }
 0x17f   :  { %v169_v28 = vpop.permute.xlu0 %168 }
 0x180   :  { %180 = vst.msk [vmem:[#allocation7 + $0x6] sm:$0x3] %vm133_vm2, %v169_v28 }
 0x181   :  { %v173_v29 = vpop.permute.xlu1 %172 }
 0x182   :  { %182 = vst.msk [vmem:[#allocation7 + $0xe] sm:$0x3] %vm133_vm2, %v173_v29 }
 0x183   :  { %284 = shalt.err (!%p281_p6)
}
 0x184   :  { %s285_s16 = scalar_lea.hbm %s389_s3, 256 }
 0x185   :  { %p286_p7 = scmp.ne.s32.totalorder %s389_s3, %s285_s16  ;;  %p289_p8 = scmp.lt.u32.totalorder %s285_s16, %s389_s3 }
 0x187   :  { %p291_p9 = pnand %p289_p8, %p286_p7 }
 0x189   :  { %294 = shalt.err (!%p291_p9)
}
 0x18a   :  { %s310_s21 = smov 32   ;;  %s311_s22 = smov 2  }
 0x18b   :  { %194 = dma.vmem_to_hbm [thread:$0]  %s189_s12, 256, %s389_s3, [#allocation4], %s310_s21, %s310_s21, %s311_s22  }
 0x18c   :  { %299 = dma.done.wait [#allocation4], 256  }
 0x18d   :  { %300 = vsyncadd [#allocation4], 4294967040 }
 0x18e   :  { %198 = vsyncpa [#allocation3], 1 }
 0x18f   :  { %199 = vsyncpa [#allocation6], 1 }
 0x190   :  { %200 = vsyncpa [#allocation4], 1 }

</bundles_post_ra>
